<compile_context>
chip_gen: v6e
topology: v6e:2x2x1
jax: 0.10.0
libtpu: 0.0.40
codegen_flags: <defaults>
</compile_context>

<pallas_src>
from functools import partial

import jax
import jax.numpy as jnp
from jax.experimental import pallas as pl
from jax.experimental.pallas import tpu as pltpu


_LANE = 128                   # TPU lane width
_TARGET_TILE_BYTES = 2 << 20  # ~2 MiB per block; x4 (in+out, dbl-buffered) = 8 MiB
_FAST_PATH_BYTES = 1 << 20    # below this, plain fused XLA beats a Pallas launch


def _round_up(x: int, m: int) -> int:
    return ((x + m - 1) // m) * m


def _round_down(x: int, m: int) -> int:
    return (x // m) * m


def _sublane_multiple(itemsize: int) -> int:
    # second-minor tiling requirement per dtype width
    return {4: 8, 2: 16, 1: 32}.get(itemsize, 8)


def _log1p_scale_kernel(x_ref, o_ref, *, scale):
    # True division to match torch.div(x, scale) bit-for-bit; divide + log1p
    # go to VALU/EUP, which have huge slack under the HBM roofline.
    # Out-of-bounds (masked) lanes/rows of edge blocks may produce NaN here;
    # those stores are discarded by Pallas, so it is safe.
    o_ref[...] = jnp.log1p(x_ref[...] / scale).astype(o_ref.dtype)


def log1p_scaling(
    x: jax.Array,
    scale: float = 1.0,
    *,
    target_tile_bytes: int = _TARGET_TILE_BYTES,
    force_pallas: bool = False,
) -> jax.Array:
    if scale <= 0:
        raise ValueError("scale should be > 0.")
    scale = float(scale)

    orig_shape = x.shape
    n = int(x.size)
    if n == 0:
        return x

    in_itemsize = jnp.dtype(x.dtype).itemsize
    out_dtype = jnp.result_type(x.dtype, scale)  # matches torch true-division promotion
    out_itemsize = jnp.dtype(out_dtype).itemsize

    # Small-input fast path: Pallas launch + grid machinery is pure overhead.
    if (not force_pallas) and n * in_itemsize < _FAST_PATH_BYTES:
        return jnp.log1p(x / scale)

    # 2-D view in the array's natural minor-most layout.  Collapsing leading
    # dims is layout-preserving (a bitcast) in the common case, so no copy.
    if x.ndim >= 2:
        x2 = x.reshape(-1, x.shape[-1])
    else:
        x2 = x.reshape(1, -1)
    M, K = x2.shape

    sub = max(_sublane_multiple(in_itemsize), _sublane_multiple(out_itemsize))
    row_bytes = K * max(in_itemsize, out_itemsize)

    # --- lane tile -----------------------------------------------------------
    if sub * row_bytes <= target_tile_bytes:
        # Whole last dim in a single block (legal for any K: "equal to the
        # full array dim" satisfies the tiling constraint even if ragged).
        tk = K
    else:
        # Very wide last dim: tile lanes in multiples of 128; the single
        # ragged edge block (if any) is masked by Pallas.
        tk = max(_LANE, _round_down(
            target_tile_bytes // (sub * max(in_itemsize, out_itemsize)), _LANE))
        tk = min(tk, _round_up(K, _LANE))

    # --- sublane (row) tile --------------------------------------------------
    tm = max(sub, _round_down(
        target_tile_bytes // (tk * max(in_itemsize, out_itemsize)), sub))
    tm = min(tm, _round_up(M, sub))

    # Ensure >= 2 grid steps when there is enough work, so both v7x
    # TensorCores get a share of the "parallel" grid.
    if pl.cdiv(M, tm) * pl.cdiv(K, tk) == 1:
        if M > 2 * sub:
            tm = _round_up(pl.cdiv(M, 2), sub)
        elif K >= 2 * _LANE:
            tk = _round_up(pl.cdiv(K, 2), _LANE)

    grid = (pl.cdiv(M, tm), pl.cdiv(K, tk))
    kernel = partial(_log1p_scale_kernel, scale=scale)

    out = pl.pallas_call(
        kernel,
        out_shape=jax.ShapeDtypeStruct((M, K), out_dtype),
        grid_spec=pltpu.PrefetchScalarGridSpec(
            num_scalar_prefetch=0,
            grid=grid,
            in_specs=[pl.BlockSpec((tm, tk), lambda i, j: (i, j))],
            out_specs=pl.BlockSpec((tm, tk), lambda i, j: (i, j)),
        ),
        compiler_params=pltpu.CompilerParams(
            dimension_semantics=("parallel", "parallel"),
        ),
        cost_estimate=pl.CostEstimate(
            flops=n,
            transcendentals=n,
            bytes_accessed=n * (in_itemsize + out_itemsize),
        ),
    )(x2)

    return out.reshape(orig_shape)


if __name__ == "__main__":
    root = jax.random.PRNGKey(0)
    k_small, k_lane, k_med = jax.random.split(root, 3)
    scale = 2.5

    # 1) Module-consistent small NCHW input (batch=2, channels=4, 16x16).
    #    Goes through the small-input fast path by default.
    x_small = jax.random.uniform(
        k_small, (2, 4, 16, 16), dtype=jnp.float32, minval=0.0, maxval=10.0
    )
    ref_small = jnp.log1p(x_small / scale)
    y_small = jax.block_until_ready(log1p_scaling(x_small, scale))
    assert y_small.shape == x_small.shape and y_small.dtype == x_small.dtype
    assert jnp.allclose(y_small, ref_small, atol=1e-6, rtol=1e-6), "fast path mismatch"

    # 2) Same small input, forced through Pallas: ragged 16-lane last dim,
    #    full-dim lane block + 2-step row grid (exercises edge masking).
    y_forced = jax.block_until_ready(log1p_scaling(x_small, scale, force_pallas=True))
    assert y_forced.shape == x_small.shape and y_forced.dtype == x_small.dtype
    assert jnp.allclose(y_forced, ref_small, atol=1e-6, rtol=1e-6), "pallas (small) mismatch"

    # 3) Lane-aligned last dim (128): full-width unmasked stores, 2-step grid.
    x_lane = jax.random.uniform(
        k_lane, (2, 4, 64, 128), dtype=jnp.float32, minval=0.0, maxval=10.0
    )
    ref_lane = jnp.log1p(x_lane / scale)
    y_lane = jax.block_until_ready(log1p_scaling(x_lane, scale, force_pallas=True))
    assert y_lane.shape == x_lane.shape and y_lane.dtype == x_lane.dtype
    assert jnp.allclose(y_lane, ref_lane, atol=1e-6, rtol=1e-6), "pallas (lane) mismatch"

    # 4) Moderately larger, ragged-size input (last dim 257, not a multiple of
    #    128): default Pallas path, multi-step grid, zero wrapper copies.
    x_med = jax.random.uniform(
        k_med, (2, 4, 128, 257), dtype=jnp.float32, minval=0.0, maxval=10.0
    )
    ref_med = jnp.log1p(x_med / scale)
    y_med = jax.block_until_ready(log1p_scaling(x_med, scale))
    assert y_med.shape == x_med.shape and y_med.dtype == x_med.dtype
    assert jnp.allclose(y_med, ref_med, atol=1e-6, rtol=1e-6), "pallas (medium) mismatch"

    print("KERNEL_OK")
</pallas_src>

<mosaic_0001>
module attributes {stable_mosaic.version = 11 : i64} {
  func.func @_log1p_scale_kernel(%arg0: i32, %arg1: i32, %arg2: memref<64x16xf32, #tpu.memory_space<vmem>>, %arg3: memref<64x16xf32, #tpu.memory_space<vmem>>) attributes {dimension_semantics = [#tpu.dimension_semantics<parallel>, #tpu.dimension_semantics<parallel>], iteration_bounds = array<i64: 2, 1>, scalar_prefetch = 0 : i64, scratch_operands = 0 : i64, tpu.core_type = #tpu.core_type<tc>, window_params = [{transform_indices = @transform_0, window_bounds = array<i64: 64, 16>}, {transform_indices = @transform_1, window_bounds = array<i64: 64, 16>}]} {
    %c0 = arith.constant 0 : index
    %c0_0 = arith.constant 0 : index
    %0 = vector.load %arg2[%c0, %c0_0] : memref<64x16xf32, #tpu.memory_space<vmem>>, vector<64x16xf32>
    %cst = arith.constant 2.500000e+00 : f32
    %1 = vector.broadcast %cst : f32 to vector<64x16xf32>
    %2 = arith.divf %0, %1 : vector<64x16xf32>
    %3 = math.log1p %2 : vector<64x16xf32>
    %c0_1 = arith.constant 0 : index
    %c0_2 = arith.constant 0 : index
    %4 = vector.load %arg3[%c0_1, %c0_2] : memref<64x16xf32, #tpu.memory_space<vmem>>, vector<64x16xf32>
    tpu.vector_store %arg3[%c0_1, %c0_2], %3 {strides = array<i32>} : memref<64x16xf32, #tpu.memory_space<vmem>>, vector<64x16xf32>,
    return
  }
  func.func @transform_0(%arg0: i32, %arg1: i32) -> (i32, i32) {
    %c0_i32 = arith.constant 0 : i32
    return %arg0, %arg1 : i32, i32
  }
  func.func @transform_1(%arg0: i32, %arg1: i32) -> (i32, i32) {
    %c0_i32 = arith.constant 0 : i32
    return %arg0, %arg1 : i32, i32
  }
}

</mosaic_0001>

<bundles_post_ra>
// kernel: tpu_custom_call.1
= control target key start
LH: loop header
LB: loop body
LE: loop exit
PB: predicated region body
PF: predicated region fallthrough
CT: control target
= control target key end

     0   :  { %s412_s6 = smov 0   ;;  %s414_s7 = smov 0   ;;  %s518_s0 = inlined_call_operand.vmem [shape: f32[128,16], index: 0, kind: input, shape index: {}]   ;;  %s519_s1 = inlined_call_operand.vmem [shape: f32[128,16], index: 1, kind: output, shape index: {}]  }
   0x1   :  { %s416_s8 = smov 0  }
   0x2 LB: > { %s23_s9 = sadd.s32 1, %s396_s7  ;;  %p331_p0 = scmp.ge.s32.totalorder %s400_s8, 1  ;;  %s400_s8 = sphi %s416_s8, %s11_s8   ;;  %s396_s7 = sphi %s414_s7, %s529_s7   ;;  %s392_s6 = sphi %s412_s6, %s528_s6  }
   0x3   : > { %p25_p1 = scmp.ge.s32.totalorder %s23_s9, 2  ;;  %p107_p2 = scmp.lt.s32.totalorder %s400_s8, 3 }
   0x5   : > { %s531_s9 = smov (%p25_p1, %s23_s9), 0  ;;  %p108_p3 = pnand %p331_p0, %p107_p2 }
   0x6   : > { %s332_s10 = sshll.u32 (!%p108_p3), %s392_s6, 3 }
   0x7   : > { %111 = sbr.rel (%p108_p3) target bundleno = 46 (0x2e), region = 24  ;;  %p134_p4 = scmp.lt.s32.totalorder (!%p108_p3), %s332_s10, 15 }
   0xc   : > { %s533_s10 = smov (!%p134_p4, %s332_s10), 15  ;;  %vm240_vm0 = vcmask 130048  }
   0xd   : > { %s333_s11 = sshll.u32 %s533_s10, 3 }
   0xe   : > { %s140_s14 = scalar_lea.vmem %s518_s0, %s333_s11  ;;  %s469_s17 = scalar_lea.vmem %s519_s1, %s333_s11 }
   0xf   : > { %v151_v0 = vld [vmem:[%s140_s14] sm:$0xff]  ;;  %v152_v1 = vld [vmem:[%s140_s14 + $0x8] sm:$0xff]  ;;  %v153_v2 = vld [vmem:[%s140_s14 + $0x10] sm:$0xff] }
  0x10   : > { %v160_v3 = vmul.f32 0.4, %v151_v0  ;;  %v161_v4 = vmul.f32 0.4, %v152_v1  ;;  %v162_v5 = vmul.f32 0.4, %v153_v2 }
  0x11   : > { %v154_v9 = vld [vmem:[%s140_s14 + $0x18] sm:$0xff]  ;;  %v155_v10 = vld [vmem:[%s140_s14 + $0x20] sm:$0xff]  ;;  %v156_v11 = vld [vmem:[%s140_s14 + $0x28] sm:$0xff] }
  0x12   : > { %v168_v6 = vadd.f32 1.0, %v160_v3  ;;  %v177_v7 = vadd.f32 1.0, %v161_v4  ;;  %v186_v8 = vadd.f32 1.0, %v162_v5  ;;  %v157_v12 = vld [vmem:[%s140_s14 + $0x30] sm:$0xff]  ;;  %v163_v13 = vmul.f32 0.4, %v154_v9 }
  0x13   : > { %v438_v14 = vmul.f32 0.4, %v155_v10  ;;  %v440_v15 = vmul.f32 0.4, %v156_v11  ;;  %v171_v16 = vmul.f32 -0.5, %v160_v3  ;;  %v180_v19 = vmul.f32 -0.5, %v161_v4 }
  0x14   : > { %362 = vlog2.f32 %v168_v6  ;;  %v195_v17 = vadd.f32 1.0, %v163_v13  ;;  %v442_v18 = vmul.f32 0.4, %v157_v12  ;;  %v189_v20 = vmul.f32 -0.5, %v162_v5  ;;  %v158_v23 = vld [vmem:[%s140_s14 + $0x38] sm:$0xff] }
  0x15   : > { %364 = vlog2.f32 %v177_v7  ;;  %v204_v21 = vadd.f32 1.0, %v438_v14  ;;  %v213_v22 = vadd.f32 1.0, %v440_v15  ;;  %v172_v24 = vadd.f32 1.0, %v171_v16 }
  0x16   : > { %366 = vlog2.f32 %v186_v8  ;;  %v174_v25 = vand.u32 2147483647, %v160_v3  ;;  %v222_v26 = vadd.f32 1.0, %v442_v18  ;;  %v181_v27 = vadd.f32 1.0, %v180_v19 }
  0x17   : > { %368 = vlog2.f32 %v195_v17  ;;  %v183_v28 = vand.u32 2147483647, %v161_v4  ;;  %v190_v29 = vadd.f32 1.0, %v189_v20  ;;  %v192_v30 = vand.u32 2147483647, %v162_v5 }
  0x18   : > { %370 = vlog2.f32 %v204_v21  ;;  %v198_v31 = vmul.f32 -0.5, %v163_v13  ;;  %v447_v32 = vmul.f32 0.4, %v158_v23  ;;  %v207_v33 = vmul.f32 -0.5, %v438_v14 }
  0x19   : > { %372 = vlog2.f32 %v213_v22  ;;  %v173_v34 = vmul.f32 %v172_v24, %v160_v3  ;;  %vm450_vm1 = vcmp.lt.f32.partialorder %v174_v25, 0.0004427343  ;;  %v216_v36 = vmul.f32 -0.5, %v440_v15 }
  0x1a   : > { %374 = vlog2.f32 %v222_v26  ;;  %v231_v37 = vadd.f32 1.0, %v447_v32  ;;  %v182_v39 = vmul.f32 %v181_v27, %v161_v4  ;;  %vm456_vm2 = vcmp.lt.f32.partialorder %v183_v28, 0.0004427343 }
  0x1b   : > { %v191_v41 = vmul.f32 %v190_v29, %v162_v5  ;;  %vm460_vm3 = vcmp.lt.f32.partialorder %v192_v30, 0.0004427343  ;;  %v199_v45 = vadd.f32 1.0, %v198_v31  ;;  %v225_v46 = vmul.f32 -0.5, %v442_v18 }
  0x1c   : > { %376 = vlog2.f32 %v231_v37  ;;  %v201_v49 = vand.u32 2147483647, %v163_v13  ;;  %v208_v50 = vadd.f32 1.0, %v207_v33  ;;  %v210_v53 = vand.u32 2147483647, %v438_v14 }
  0x1d   : > { %v217_v54 = vadd.f32 1.0, %v216_v36  ;;  %v219_v56 = vand.u32 2147483647, %v440_v15  ;;  %v200_v58 = vmul.f32 %v199_v45, %v163_v13  ;;  %v226_v59 = vadd.f32 1.0, %v225_v46 }
  0x1e   : > { %v234_v60 = vmul.f32 -0.5, %v447_v32  ;;  %vm487_vm4 = vcmp.lt.f32.partialorder %v201_v49, 0.0004427343  ;;  %v209_v63 = vmul.f32 %v208_v50, %v438_v14  ;;  %v228_v0 = vand.u32 2147483647, %v442_v18 }
  0x1f   : > { %vm211_vm5 = vcmp.lt.f32.partialorder %v210_v53, 0.0004427343  ;;  %v218_v3 = vmul.f32 %v217_v54, %v440_v15  ;;  %vm220_vm6 = vcmp.lt.f32.partialorder %v219_v56, 0.0004427343  ;;  %v227_v8 = vmul.f32 %v226_v59, %v442_v18 }
  0x20   : > { %v235_v9 = vadd.f32 1.0, %v234_v60  ;;  %vm229_vm7 = vcmp.lt.f32.partialorder %v228_v0, 0.0004427343  ;;  %v237_v12 = vand.u32 2147483647, %v447_v32 }
  0x21   : > { %v363_v38 = vpop.eup %362 }
  0x22   : > { %v365_v43 = vpop.eup %364  ;;  %v170_v44 = vmul.f32 0.6931472, %v363_v38  ;;  %v236_v16 = vmul.f32 %v235_v9, %v447_v32  ;;  %vm238_vm8 = vcmp.lt.f32.partialorder %v237_v12, 0.0004427343 }
  0x23   : > { %v367_v47 = vpop.eup %366  ;;  %v179_v48 = vmul.f32 0.6931472, %v365_v43 }
  0x24   : > { %v176_v51 = vsel %vm450_vm1, %v173_v34, %v170_v44  ;;  %v188_v52 = vmul.f32 0.6931472, %v367_v47  ;;  %v369_v61 = vpop.eup %368 }
  0x25   : > { %241 = vst.msk [vmem:[%s469_s17] sm:$0xff] %vm240_vm0, %v176_v51  ;;  %v185_v55 = vsel %vm456_vm2, %v182_v39, %v179_v48  ;;  %v371_v1 = vpop.eup %370  ;;  %v197_v2 = vmul.f32 0.6931472, %v369_v61 }
  0x26   : > { %242 = vst.msk [vmem:[%s469_s17 + $0x8] sm:$0xff] %vm240_vm0, %v185_v55  ;;  %v194_v57 = vsel %vm460_vm3, %v191_v41, %v188_v52  ;;  %v373_v4 = vpop.eup %372  ;;  %v206_v5 = vmul.f32 0.6931472, %v371_v1 }
  0x27   : > { %243 = vst.msk [vmem:[%s469_s17 + $0x10] sm:$0xff] %vm240_vm0, %v194_v57  ;;  %v203_v6 = vsel %vm487_vm4, %v200_v58, %v197_v2  ;;  %v215_v7 = vmul.f32 0.6931472, %v373_v4  ;;  %v375_v10 = vpop.eup %374 }
  0x28   : > { %244 = vst.msk [vmem:[%s469_s17 + $0x18] sm:$0xff] %vm240_vm0, %v203_v6  ;;  %v212_v11 = vsel %vm211_vm5, %v209_v63, %v206_v5  ;;  %v224_v14 = vmul.f32 0.6931472, %v375_v10 }
  0x29   : > { %245 = vst.msk [vmem:[%s469_s17 + $0x20] sm:$0xff] %vm240_vm0, %v212_v11  ;;  %v221_v13 = vsel %vm220_vm6, %v218_v3, %v215_v7  ;;  %v377_v17 = vpop.eup %376 }
  0x2a   : > { %246 = vst.msk [vmem:[%s469_s17 + $0x28] sm:$0xff] %vm240_vm0, %v221_v13  ;;  %v230_v15 = vsel %vm229_vm7, %v227_v8, %v224_v14  ;;  %v233_v18 = vmul.f32 0.6931472, %v377_v17 }
  0x2b   : > { %247 = vst.msk [vmem:[%s469_s17 + $0x30] sm:$0xff] %vm240_vm0, %v230_v15 }
  0x2c   : > { %v239_v19 = vsel %vm238_vm8, %v236_v16, %v233_v18 }
  0x2d   : > { %248 = vst.msk [vmem:[%s469_s17 + $0x38] sm:$0xff] %vm240_vm0, %v239_v19 }
  0x2e PF: > { %s11_s8 = sadd.s32 1, %s400_s8   ;;  %s528_s6 = smov %s396_s7 }
  0x2f   : > { %p8_p5 = scmp.ge.s32.totalorder %s11_s8, 4   ;;  %s529_s7 = smov %s531_s9 }
  0x31   :  { %10 = sbr.rel (!%p8_p5) target bundleno = 2 (0x2), region = 54 }

</bundles_post_ra>
